<compile_context>
chip_gen: v5e
topology: v5e:2x2
jax: 0.10.0
libtpu: 0.0.40
codegen_flags: <defaults>
</compile_context>

<pallas_src>
import functools

import jax
import jax.numpy as jnp
from jax.experimental import pallas as pl
from jax.experimental.pallas import tpu as pltpu


# ----------------------------------------------------------------------------
# Pallas kernel: whole MLP + softmax / value epilogue resident in VMEM, one shot.
# ----------------------------------------------------------------------------
def _a2c_kernel(x_ref, w1_ref, b1_ref, w2_ref, b2_ref,
                wa_ref, ba_ref, wc_ref, bc_ref, probs_ref, v_ref):
    # lin1 + ReLU: x cast to bf16 in-kernel (free under the MXU shadow),
    # f32 accumulate, f32 epilogue.
    h1 = jnp.dot(x_ref[...].astype(jnp.bfloat16), w1_ref[...],
                 preferred_element_type=jnp.float32) + b1_ref[...]
    h1 = jnp.maximum(h1, 0.0)                                   # (1, 128) f32

    # lin2 + ReLU
    h2 = jnp.dot(h1.astype(jnp.bfloat16), w2_ref[...],
                 preferred_element_type=jnp.float32) + b2_ref[...]
    h2 = jnp.maximum(h2, 0.0)                                   # (1, 256) f32
    h2b = h2.astype(jnp.bfloat16)

    # Critic head, all nodes at once: v[n] = <w_crit[:, n], h2> + b_crit[n].
    # VPU multiply (sublane broadcast of h2) + lane reduce, f32 throughout;
    # writes the (N, 1) result directly (no transpose / post-kernel reshape).
    v_ref[...] = jnp.sum(wc_ref[...] * h2, axis=-1, keepdims=True) + bc_ref[...]

    # Actor head + per-node softmax fused into the epilogue.  N is tiny, so a
    # static unroll of narrow (1,256)x(256,A) MXU matmuls is essentially free;
    # exp goes to the EUP, max/sum are tiny XLU lane reduces.
    n_nodes = wa_ref.shape[0]
    for n in range(n_nodes):
        logits = (jnp.dot(h2b, wa_ref[n], preferred_element_type=jnp.float32)
                  + ba_ref[n])                                   # (1, A) f32
        m = jnp.max(logits, axis=-1, keepdims=True)
        e = jnp.exp(logits - m)
        probs_ref[pl.ds(n, 1), :] = e / jnp.sum(e, axis=-1, keepdims=True)


# ----------------------------------------------------------------------------
# One-time parameter packing (hoisted out of the per-call forward).
# ----------------------------------------------------------------------------
def prepare_params(params, num_nodes, num_actions):
    """Pack / cast SimpleA2C weights for the fused kernel. Call once."""
    N, A = num_nodes, num_actions
    # Actor: torch does a.reshape(N, A) on the (A*N,) head output, i.e. output
    # column j = n*A + a.  Pack per-node weight blocks (N, 256, A).
    wa = jnp.transpose(params["w_act"].reshape(256, N, A), (1, 0, 2))
    ba = params["b_act"].reshape(N, A)[:, None, :]               # (N, 1, A)
    return {
        "w1": params["w1"].astype(jnp.bfloat16),                 # (D, 128)
        "b1": params["b1"].astype(jnp.float32),                  # (1, 128)
        "w2": params["w2"].astype(jnp.bfloat16),                 # (128, 256)
        "b2": params["b2"].astype(jnp.float32),                  # (1, 256)
        "wa": wa.astype(jnp.bfloat16),                           # (N, 256, A)
        "ba": ba.astype(jnp.float32),                            # (N, 1, A)
        "wc": params["w_crit"].T.astype(jnp.float32),            # (N, 256)
        "bc": params["b_crit"].reshape(N, 1).astype(jnp.float32),  # (N, 1)
    }


# ----------------------------------------------------------------------------
# Forward wrapper
# ----------------------------------------------------------------------------
@functools.partial(jax.jit, static_argnames=("num_nodes", "num_actions"))
def simple_a2c_forward(x, edge_index, edge_weight, prepped, *, num_nodes, num_actions):
    # SimpleA2C.forward unpacks edge_index / edge_attr but never uses them.
    del edge_index, edge_weight

    N, A = num_nodes, num_actions
    D = x.shape[0] * x.shape[1]                  # num_nodes * num_node_features
    x_flat = x.reshape(1, D)                     # row-major flatten (matches torch);
                                                 # bf16 cast happens inside the kernel

    flops = 2 * (D * 128 + 128 * 256 + 256 * (N * A) + 256 * N)
    bytes_accessed = (4 * D + 2 * D * 128 + 4 * 128 + 2 * 128 * 256 + 4 * 256
                      + 2 * 256 * N * A + 4 * N * A + 4 * 256 * N + 4 * N
                      + 4 * N * A + 4 * N)

    probs, v = pl.pallas_call(
        _a2c_kernel,
        out_shape=(jax.ShapeDtypeStruct((N, A), jnp.float32),
                   jax.ShapeDtypeStruct((N, 1), jnp.float32)),
        in_specs=[pl.BlockSpec(memory_space=pltpu.MemorySpace.VMEM)] * 9,
        out_specs=[pl.BlockSpec(memory_space=pltpu.MemorySpace.VMEM),
                   pl.BlockSpec(memory_space=pltpu.MemorySpace.VMEM)],
        compiler_params=pltpu.CompilerParams(vmem_limit_bytes=32 * 1024 * 1024),
        cost_estimate=pl.CostEstimate(flops=flops, transcendentals=N * A,
                                      bytes_accessed=bytes_accessed),
    )(x_flat, prepped["w1"], prepped["b1"], prepped["w2"], prepped["b2"],
      prepped["wa"], prepped["ba"], prepped["wc"], prepped["bc"])
    return probs, v


# ----------------------------------------------------------------------------
# Deterministic parameter init matching torch.nn.Linear shapes (stored (in, out)).
# ----------------------------------------------------------------------------
def init_params(num_node_features, num_nodes, num_actions, key=None):
    key = jax.random.PRNGKey(0) if key is None else key
    k1, k2, k3, k4 = jax.random.split(key, 4)
    D = num_node_features * num_nodes

    def lin(k, fan_in, fan_out):
        lim = 1.0 / float(fan_in) ** 0.5         # torch.nn.Linear default bound
        kw, kb = jax.random.split(k)
        w = jax.random.uniform(kw, (fan_in, fan_out), jnp.float32, -lim, lim)
        b = jax.random.uniform(kb, (1, fan_out), jnp.float32, -lim, lim)
        return w, b

    w1, b1 = lin(k1, D, 128)
    w2, b2 = lin(k2, 128, 256)
    w_act, b_act = lin(k3, 256, num_actions * num_nodes)
    w_crit, b_crit = lin(k4, 256, num_nodes)
    return {"w1": w1, "b1": b1, "w2": w2, "b2": b2,
            "w_act": w_act, "b_act": b_act, "w_crit": w_crit, "b_crit": b_crit}


def _reference_forward(x, params, num_nodes, num_actions):
    """Pure-JAX f32 reference mirroring the torch module."""
    xf = x.reshape(1, -1)
    h1 = jax.nn.relu(xf @ params["w1"] + params["b1"])
    h2 = jax.nn.relu(h1 @ params["w2"] + params["b2"])
    logits = (h2 @ params["w_act"] + params["b_act"]).reshape(num_nodes, num_actions)
    probs = jax.nn.softmax(logits, axis=-1)
    v = (h2 @ params["w_crit"] + params["b_crit"]).reshape(num_nodes, 1)
    return probs, v


if __name__ == "__main__":
    # Small deterministic example: N=8 nodes, F=16 node features, A=4 actions.
    N, F_IN, A, E = 8, 16, 4, 16
    key = jax.random.PRNGKey(0)
    kx, ke, kw = jax.random.split(key, 3)

    x = jax.random.normal(kx, (N, F_IN), jnp.float32)
    # Graph connectivity is part of the Data object but unused by SimpleA2C.forward;
    # built here only to mirror the module's interface.
    src = jax.random.randint(ke, (E,), 0, N)
    dst = jnp.roll(src, 3)
    edge_index = jnp.stack([src, dst], axis=0).astype(jnp.int32)
    edge_weight = jax.random.uniform(kw, (E,), jnp.float32, 0.5, 1.5)

    params = init_params(F_IN, N, A)
    prepped = prepare_params(params, N, A)       # one-time packing/casting
    jax.block_until_ready(prepped)

    probs, v = simple_a2c_forward(x, edge_index, edge_weight, prepped,
                                  num_nodes=N, num_actions=A)
    jax.block_until_ready((probs, v))

    assert probs.shape == (N, A) and probs.dtype == jnp.float32
    assert v.shape == (N, 1) and v.dtype == jnp.float32
    assert bool(jnp.allclose(probs.sum(axis=-1), 1.0, atol=1e-4))

    # Loose-tolerance check vs f32 reference (bf16 MXU operands drift slightly).
    p_ref, v_ref = _reference_forward(x, params, N, A)
    assert bool(jnp.allclose(probs, p_ref, atol=2e-2, rtol=2e-2))
    assert bool(jnp.allclose(v, v_ref, atol=2e-2, rtol=2e-2))

    print("KERNEL_OK")
</pallas_src>

<mosaic_0001>
module attributes {stable_mosaic.version = 11 : i64} {
  func.func @_a2c_kernel(%arg0: memref<1x128xf32, #tpu.memory_space<vmem>>, %arg1: memref<128x128xbf16, #tpu.memory_space<vmem>>, %arg2: memref<1x128xf32, #tpu.memory_space<vmem>>, %arg3: memref<128x256xbf16, #tpu.memory_space<vmem>>, %arg4: memref<1x256xf32, #tpu.memory_space<vmem>>, %arg5: memref<8x256x4xbf16, #tpu.memory_space<vmem>>, %arg6: memref<8x1x4xf32, #tpu.memory_space<vmem>>, %arg7: memref<8x256xf32, #tpu.memory_space<vmem>>, %arg8: memref<8x1xf32, #tpu.memory_space<vmem>>, %arg9: memref<8x4xf32, #tpu.memory_space<vmem>>, %arg10: memref<8x1xf32, #tpu.memory_space<vmem>>) attributes {dimension_semantics = [], scalar_prefetch = 0 : i64, scratch_operands = 0 : i64, tpu.core_type = #tpu.core_type<tc>} {
    %c0 = arith.constant 0 : index
    %c0_0 = arith.constant 0 : index
    %0 = vector.load %arg0[%c0, %c0_0] : memref<1x128xf32, #tpu.memory_space<vmem>>, vector<1x128xf32>
    %1 = arith.truncf %0 : vector<1x128xf32> to vector<1x128xbf16>
    %c0_1 = arith.constant 0 : index
    %c0_2 = arith.constant 0 : index
    %2 = vector.load %arg1[%c0_1, %c0_2] : memref<128x128xbf16, #tpu.memory_space<vmem>>, vector<128x128xbf16>
    %cst = arith.constant dense<0.000000e+00> : vector<1x128xf32>
    %3 = tpu.matmul %1, %2, %cst {dimension_numbers = #tpu.dot_dimension_numbers<[1], [0], [0], [1], [0, 0, 1, 1], [], []>} : vector<1x128xbf16>, vector<128x128xbf16>, vector<1x128xf32> -> vector<1x128xf32>
    %c0_3 = arith.constant 0 : index
    %c0_4 = arith.constant 0 : index
    %4 = vector.load %arg2[%c0_3, %c0_4] : memref<1x128xf32, #tpu.memory_space<vmem>>, vector<1x128xf32>
    %5 = arith.addf %3, %4 : vector<1x128xf32>
    %cst_5 = arith.constant 0.000000e+00 : f32
    %6 = vector.broadcast %cst_5 : f32 to vector<1x128xf32>
    %7 = arith.maximumf %5, %6 : vector<1x128xf32>
    %8 = arith.truncf %7 : vector<1x128xf32> to vector<1x128xbf16>
    %c0_6 = arith.constant 0 : index
    %c0_7 = arith.constant 0 : index
    %9 = vector.load %arg3[%c0_6, %c0_7] : memref<128x256xbf16, #tpu.memory_space<vmem>>, vector<128x256xbf16>
    %cst_8 = arith.constant dense<0.000000e+00> : vector<1x256xf32>
    %10 = tpu.matmul %8, %9, %cst_8 {dimension_numbers = #tpu.dot_dimension_numbers<[1], [0], [0], [1], [0, 0, 1, 1], [], []>} : vector<1x128xbf16>, vector<128x256xbf16>, vector<1x256xf32> -> vector<1x256xf32>
    %c0_9 = arith.constant 0 : index
    %c0_10 = arith.constant 0 : index
    %11 = vector.load %arg4[%c0_9, %c0_10] : memref<1x256xf32, #tpu.memory_space<vmem>>, vector<1x256xf32>
    %12 = arith.addf %10, %11 : vector<1x256xf32>
    %cst_11 = arith.constant 0.000000e+00 : f32
    %13 = vector.broadcast %cst_11 : f32 to vector<1x256xf32>
    %14 = arith.maximumf %12, %13 : vector<1x256xf32>
    %15 = arith.truncf %14 : vector<1x256xf32> to vector<1x256xbf16>
    %c0_12 = arith.constant 0 : index
    %c0_13 = arith.constant 0 : index
    %16 = vector.load %arg7[%c0_12, %c0_13] : memref<8x256xf32, #tpu.memory_space<vmem>>, vector<8x256xf32>
    %17 = vector.broadcast %14 : vector<1x256xf32> to vector<8x256xf32>
    %18 = arith.mulf %16, %17 : vector<8x256xf32>
    %cst_14 = arith.constant dense<0.000000e+00> : vector<8xf32>
    %19 = vector.multi_reduction <add>, %18, %cst_14 [1] : vector<8x256xf32> to vector<8xf32>
    %20 = vector.shape_cast %19 : vector<8xf32> to vector<8x1xf32>
    %c0_15 = arith.constant 0 : index
    %c0_16 = arith.constant 0 : index
    %21 = vector.load %arg8[%c0_15, %c0_16] : memref<8x1xf32, #tpu.memory_space<vmem>>, vector<8x1xf32>
    %22 = arith.addf %20, %21 : vector<8x1xf32>
    %c0_17 = arith.constant 0 : index
    %c0_18 = arith.constant 0 : index
    %23 = vector.load %arg10[%c0_17, %c0_18] : memref<8x1xf32, #tpu.memory_space<vmem>>, vector<8x1xf32>
    tpu.vector_store %arg10[%c0_17, %c0_18], %22 {strides = array<i32>} : memref<8x1xf32, #tpu.memory_space<vmem>>, vector<8x1xf32>,
    %c0_19 = arith.constant 0 : index
    %c0_20 = arith.constant 0 : index
    %c0_21 = arith.constant 0 : index
    %24 = vector.load %arg5[%c0_19, %c0_20, %c0_21] : memref<8x256x4xbf16, #tpu.memory_space<vmem>>, vector<1x256x4xbf16>
    %25 = vector.shape_cast %24 : vector<1x256x4xbf16> to vector<256x4xbf16>
    %cst_22 = arith.constant dense<0.000000e+00> : vector<1x4xf32>
    %26 = tpu.matmul %15, %25, %cst_22 {dimension_numbers = #tpu.dot_dimension_numbers<[1], [0], [0], [1], [0, 0, 1, 1], [], []>} : vector<1x256xbf16>, vector<256x4xbf16>, vector<1x4xf32> -> vector<1x4xf32>
    %c0_23 = arith.constant 0 : index
    %c0_24 = arith.constant 0 : index
    %c0_25 = arith.constant 0 : index
    %27 = vector.load %arg6[%c0_23, %c0_24, %c0_25] : memref<8x1x4xf32, #tpu.memory_space<vmem>>, vector<1x1x4xf32>
    %28 = vector.shape_cast %27 : vector<1x1x4xf32> to vector<1x4xf32>
    %29 = arith.addf %26, %28 : vector<1x4xf32>
    %cst_26 = arith.constant dense<0xFF800000> : vector<1xf32>
    %30 = vector.multi_reduction <maximumf>, %29, %cst_26 [1] : vector<1x4xf32> to vector<1xf32>
    %31 = vector.shape_cast %30 : vector<1xf32> to vector<1x1xf32>
    %32 = vector.broadcast %31 : vector<1x1xf32> to vector<1x4xf32>
    %33 = arith.subf %29, %32 : vector<1x4xf32>
    %34 = math.exp %33 : vector<1x4xf32>
    %cst_27 = arith.constant dense<0.000000e+00> : vector<1xf32>
    %35 = vector.multi_reduction <add>, %34, %cst_27 [1] : vector<1x4xf32> to vector<1xf32>
    %36 = vector.shape_cast %35 : vector<1xf32> to vector<1x1xf32>
    %37 = vector.broadcast %36 : vector<1x1xf32> to vector<1x4xf32>
    %38 = arith.divf %34, %37 : vector<1x4xf32>
    %c0_28 = arith.constant 0 : index
    %c0_29 = arith.constant 0 : index
    %39 = vector.load %arg9[%c0_28, %c0_29] : memref<8x4xf32, #tpu.memory_space<vmem>>, vector<1x4xf32>
    tpu.vector_store %arg9[%c0_28, %c0_29], %38 {strides = array<i32>} : memref<8x4xf32, #tpu.memory_space<vmem>>, vector<1x4xf32>,
    %c1 = arith.constant 1 : index
    %c0_30 = arith.constant 0 : index
    %c0_31 = arith.constant 0 : index
    %40 = vector.load %arg5[%c1, %c0_30, %c0_31] : memref<8x256x4xbf16, #tpu.memory_space<vmem>>, vector<1x256x4xbf16>
    %41 = vector.shape_cast %40 : vector<1x256x4xbf16> to vector<256x4xbf16>
    %cst_32 = arith.constant dense<0.000000e+00> : vector<1x4xf32>
    %42 = tpu.matmul %15, %41, %cst_32 {dimension_numbers = #tpu.dot_dimension_numbers<[1], [0], [0], [1], [0, 0, 1, 1], [], []>} : vector<1x256xbf16>, vector<256x4xbf16>, vector<1x4xf32> -> vector<1x4xf32>
    %c1_33 = arith.constant 1 : index
    %c0_34 = arith.constant 0 : index
    %c0_35 = arith.constant 0 : index
    %43 = vector.load %arg6[%c1_33, %c0_34, %c0_35] : memref<8x1x4xf32, #tpu.memory_space<vmem>>, vector<1x1x4xf32>
    %44 = vector.shape_cast %43 : vector<1x1x4xf32> to vector<1x4xf32>
    %45 = arith.addf %42, %44 : vector<1x4xf32>
    %cst_36 = arith.constant dense<0xFF800000> : vector<1xf32>
    %46 = vector.multi_reduction <maximumf>, %45, %cst_36 [1] : vector<1x4xf32> to vector<1xf32>
    %47 = vector.shape_cast %46 : vector<1xf32> to vector<1x1xf32>
    %48 = vector.broadcast %47 : vector<1x1xf32> to vector<1x4xf32>
    %49 = arith.subf %45, %48 : vector<1x4xf32>
    %50 = math.exp %49 : vector<1x4xf32>
    %cst_37 = arith.constant dense<0.000000e+00> : vector<1xf32>
    %51 = vector.multi_reduction <add>, %50, %cst_37 [1] : vector<1x4xf32> to vector<1xf32>
    %52 = vector.shape_cast %51 : vector<1xf32> to vector<1x1xf32>
    %53 = vector.broadcast %52 : vector<1x1xf32> to vector<1x4xf32>
    %54 = arith.divf %50, %53 : vector<1x4xf32>
    %c1_38 = arith.constant 1 : index
    %c0_39 = arith.constant 0 : index
    %55 = vector.load %arg9[%c1_38, %c0_39] : memref<8x4xf32, #tpu.memory_space<vmem>>, vector<1x4xf32>
    tpu.vector_store %arg9[%c1_38, %c0_39], %54 {strides = array<i32>} : memref<8x4xf32, #tpu.memory_space<vmem>>, vector<1x4xf32>,
    %c2 = arith.constant 2 : index
    %c0_40 = arith.constant 0 : index
    %c0_41 = arith.constant 0 : index
    %56 = vector.load %arg5[%c2, %c0_40, %c0_41] : memref<8x256x4xbf16, #tpu.memory_space<vmem>>, vector<1x256x4xbf16>
    %57 = vector.shape_cast %56 : vector<1x256x4xbf16> to vector<256x4xbf16>
    %cst_42 = arith.constant dense<0.000000e+00> : vector<1x4xf32>
    %58 = tpu.matmul %15, %57, %cst_42 {dimension_numbers = #tpu.dot_dimension_numbers<[1], [0], [0], [1], [0, 0, 1, 1], [], []>} : vector<1x256xbf16>, vector<256x4xbf16>, vector<1x4xf32> -> vector<1x4xf32>
    %c2_43 = arith.constant 2 : index
    %c0_44 = arith.constant 0 : index
    %c0_45 = arith.constant 0 : index
    %59 = vector.load %arg6[%c2_43, %c0_44, %c0_45] : memref<8x1x4xf32, #tpu.memory_space<vmem>>, vector<1x1x4xf32>
    %60 = vector.shape_cast %59 : vector<1x1x4xf32> to vector<1x4xf32>
    %61 = arith.addf %58, %60 : vector<1x4xf32>
    %cst_46 = arith.constant dense<0xFF800000> : vector<1xf32>
    %62 = vector.multi_reduction <maximumf>, %61, %cst_46 [1] : vector<1x4xf32> to vector<1xf32>
    %63 = vector.shape_cast %62 : vector<1xf32> to vector<1x1xf32>
    %64 = vector.broadcast %63 : vector<1x1xf32> to vector<1x4xf32>
    %65 = arith.subf %61, %64 : vector<1x4xf32>
    %66 = math.exp %65 : vector<1x4xf32>
    %cst_47 = arith.constant dense<0.000000e+00> : vector<1xf32>
    %67 = vector.multi_reduction <add>, %66, %cst_47 [1] : vector<1x4xf32> to vector<1xf32>
    %68 = vector.shape_cast %67 : vector<1xf32> to vector<1x1xf32>
    %69 = vector.broadcast %68 : vector<1x1xf32> to vector<1x4xf32>
    %70 = arith.divf %66, %69 : vector<1x4xf32>
    %c2_48 = arith.constant 2 : index
    %c0_49 = arith.constant 0 : index
    %71 = vector.load %arg9[%c2_48, %c0_49] : memref<8x4xf32, #tpu.memory_space<vmem>>, vector<1x4xf32>
    tpu.vector_store %arg9[%c2_48, %c0_49], %70 {strides = array<i32>} : memref<8x4xf32, #tpu.memory_space<vmem>>, vector<1x4xf32>,
    %c3 = arith.constant 3 : index
    %c0_50 = arith.constant 0 : index
    %c0_51 = arith.constant 0 : index
    %72 = vector.load %arg5[%c3, %c0_50, %c0_51] : memref<8x256x4xbf16, #tpu.memory_space<vmem>>, vector<1x256x4xbf16>
    %73 = vector.shape_cast %72 : vector<1x256x4xbf16> to vector<256x4xbf16>
    %cst_52 = arith.constant dense<0.000000e+00> : vector<1x4xf32>
    %74 = tpu.matmul %15, %73, %cst_52 {dimension_numbers = #tpu.dot_dimension_numbers<[1], [0], [0], [1], [0, 0, 1, 1], [], []>} : vector<1x256xbf16>, vector<256x4xbf16>, vector<1x4xf32> -> vector<1x4xf32>
    %c3_53 = arith.constant 3 : index
    %c0_54 = arith.constant 0 : index
    %c0_55 = arith.constant 0 : index
    %75 = vector.load %arg6[%c3_53, %c0_54, %c0_55] : memref<8x1x4xf32, #tpu.memory_space<vmem>>, vector<1x1x4xf32>
    %76 = vector.shape_cast %75 : vector<1x1x4xf32> to vector<1x4xf32>
    %77 = arith.addf %74, %76 : vector<1x4xf32>
    %cst_56 = arith.constant dense<0xFF800000> : vector<1xf32>
    %78 = vector.multi_reduction <maximumf>, %77, %cst_56 [1] : vector<1x4xf32> to vector<1xf32>
    %79 = vector.shape_cast %78 : vector<1xf32> to vector<1x1xf32>
    %80 = vector.broadcast %79 : vector<1x1xf32> to vector<1x4xf32>
    %81 = arith.subf %77, %80 : vector<1x4xf32>
    %82 = math.exp %81 : vector<1x4xf32>
    %cst_57 = arith.constant dense<0.000000e+00> : vector<1xf32>
    %83 = vector.multi_reduction <add>, %82, %cst_57 [1] : vector<1x4xf32> to vector<1xf32>
    %84 = vector.shape_cast %83 : vector<1xf32> to vector<1x1xf32>
    %85 = vector.broadcast %84 : vector<1x1xf32> to vector<1x4xf32>
    %86 = arith.divf %82, %85 : vector<1x4xf32>
    %c3_58 = arith.constant 3 : index
    %c0_59 = arith.constant 0 : index
    %87 = vector.load %arg9[%c3_58, %c0_59] : memref<8x4xf32, #tpu.memory_space<vmem>>, vector<1x4xf32>
    tpu.vector_store %arg9[%c3_58, %c0_59], %86 {strides = array<i32>} : memref<8x4xf32, #tpu.memory_space<vmem>>, vector<1x4xf32>,
    %c4 = arith.constant 4 : index
    %c0_60 = arith.constant 0 : index
    %c0_61 = arith.constant 0 : index
    %88 = vector.load %arg5[%c4, %c0_60, %c0_61] : memref<8x256x4xbf16, #tpu.memory_space<vmem>>, vector<1x256x4xbf16>
    %89 = vector.shape_cast %88 : vector<1x256x4xbf16> to vector<256x4xbf16>
    %cst_62 = arith.constant dense<0.000000e+00> : vector<1x4xf32>
    %90 = tpu.matmul %15, %89, %cst_62 {dimension_numbers = #tpu.dot_dimension_numbers<[1], [0], [0], [1], [0, 0, 1, 1], [], []>} : vector<1x256xbf16>, vector<256x4xbf16>, vector<1x4xf32> -> vector<1x4xf32>
    %c4_63 = arith.constant 4 : index
    %c0_64 = arith.constant 0 : index
    %c0_65 = arith.constant 0 : index
    %91 = vector.load %arg6[%c4_63, %c0_64, %c0_65] : memref<8x1x4xf32, #tpu.memory_space<vmem>>, vector<1x1x4xf32>
    %92 = vector.shape_cast %91 : vector<1x1x4xf32> to vector<1x4xf32>
    %93 = arith.addf %90, %92 : vector<1x4xf32>
    %cst_66 = arith.constant dense<0xFF800000> : vector<1xf32>
    %94 = vector.multi_reduction <maximumf>, %93, %cst_66 [1] : vector<1x4xf32> to vector<1xf32>
    %95 = vector.shape_cast %94 : vector<1xf32> to vector<1x1xf32>
    %96 = vector.broadcast %95 : vector<1x1xf32> to vector<1x4xf32>
    %97 = arith.subf %93, %96 : vector<1x4xf32>
    %98 = math.exp %97 : vector<1x4xf32>
    %cst_67 = arith.constant dense<0.000000e+00> : vector<1xf32>
    %99 = vector.multi_reduction <add>, %98, %cst_67 [1] : vector<1x4xf32> to vector<1xf32>
    %100 = vector.shape_cast %99 : vector<1xf32> to vector<1x1xf32>
    %101 = vector.broadcast %100 : vector<1x1xf32> to vector<1x4xf32>
    %102 = arith.divf %98, %101 : vector<1x4xf32>
    %c4_68 = arith.constant 4 : index
    %c0_69 = arith.constant 0 : index
    %103 = vector.load %arg9[%c4_68, %c0_69] : memref<8x4xf32, #tpu.memory_space<vmem>>, vector<1x4xf32>
    tpu.vector_store %arg9[%c4_68, %c0_69], %102 {strides = array<i32>} : memref<8x4xf32, #tpu.memory_space<vmem>>, vector<1x4xf32>,
    %c5 = arith.constant 5 : index
    %c0_70 = arith.constant 0 : index
    %c0_71 = arith.constant 0 : index
    %104 = vector.load %arg5[%c5, %c0_70, %c0_71] : memref<8x256x4xbf16, #tpu.memory_space<vmem>>, vector<1x256x4xbf16>
    %105 = vector.shape_cast %104 : vector<1x256x4xbf16> to vector<256x4xbf16>
    %cst_72 = arith.constant dense<0.000000e+00> : vector<1x4xf32>
    %106 = tpu.matmul %15, %105, %cst_72 {dimension_numbers = #tpu.dot_dimension_numbers<[1], [0], [0], [1], [0, 0, 1, 1], [], []>} : vector<1x256xbf16>, vector<256x4xbf16>, vector<1x4xf32> -> vector<1x4xf32>
    %c5_73 = arith.constant 5 : index
    %c0_74 = arith.constant 0 : index
    %c0_75 = arith.constant 0 : index
    %107 = vector.load %arg6[%c5_73, %c0_74, %c0_75] : memref<8x1x4xf32, #tpu.memory_space<vmem>>, vector<1x1x4xf32>
    %108 = vector.shape_cast %107 : vector<1x1x4xf32> to vector<1x4xf32>
    %109 = arith.addf %106, %108 : vector<1x4xf32>
    %cst_76 = arith.constant dense<0xFF800000> : vector<1xf32>
    %110 = vector.multi_reduction <maximumf>, %109, %cst_76 [1] : vector<1x4xf32> to vector<1xf32>
    %111 = vector.shape_cast %110 : vector<1xf32> to vector<1x1xf32>
    %112 = vector.broadcast %111 : vector<1x1xf32> to vector<1x4xf32>
    %113 = arith.subf %109, %112 : vector<1x4xf32>
    %114 = math.exp %113 : vector<1x4xf32>
    %cst_77 = arith.constant dense<0.000000e+00> : vector<1xf32>
    %115 = vector.multi_reduction <add>, %114, %cst_77 [1] : vector<1x4xf32> to vector<1xf32>
    %116 = vector.shape_cast %115 : vector<1xf32> to vector<1x1xf32>
    %117 = vector.broadcast %116 : vector<1x1xf32> to vector<1x4xf32>
    %118 = arith.divf %114, %117 : vector<1x4xf32>
    %c5_78 = arith.constant 5 : index
    %c0_79 = arith.constant 0 : index
    %119 = vector.load %arg9[%c5_78, %c0_79] : memref<8x4xf32, #tpu.memory_space<vmem>>, vector<1x4xf32>
    tpu.vector_store %arg9[%c5_78, %c0_79], %118 {strides = array<i32>} : memref<8x4xf32, #tpu.memory_space<vmem>>, vector<1x4xf32>,
    %c6 = arith.constant 6 : index
    %c0_80 = arith.constant 0 : index
    %c0_81 = arith.constant 0 : index
    %120 = vector.load %arg5[%c6, %c0_80, %c0_81] : memref<8x256x4xbf16, #tpu.memory_space<vmem>>, vector<1x256x4xbf16>
    %121 = vector.shape_cast %120 : vector<1x256x4xbf16> to vector<256x4xbf16>
    %cst_82 = arith.constant dense<0.000000e+00> : vector<1x4xf32>
    %122 = tpu.matmul %15, %121, %cst_82 {dimension_numbers = #tpu.dot_dimension_numbers<[1], [0], [0], [1], [0, 0, 1, 1], [], []>} : vector<1x256xbf16>, vector<256x4xbf16>, vector<1x4xf32> -> vector<1x4xf32>
    %c6_83 = arith.constant 6 : index
    %c0_84 = arith.constant 0 : index
    %c0_85 = arith.constant 0 : index
    %123 = vector.load %arg6[%c6_83, %c0_84, %c0_85] : memref<8x1x4xf32, #tpu.memory_space<vmem>>, vector<1x1x4xf32>
    %124 = vector.shape_cast %123 : vector<1x1x4xf32> to vector<1x4xf32>
    %125 = arith.addf %122, %124 : vector<1x4xf32>
    %cst_86 = arith.constant dense<0xFF800000> : vector<1xf32>
    %126 = vector.multi_reduction <maximumf>, %125, %cst_86 [1] : vector<1x4xf32> to vector<1xf32>
    %127 = vector.shape_cast %126 : vector<1xf32> to vector<1x1xf32>
    %128 = vector.broadcast %127 : vector<1x1xf32> to vector<1x4xf32>
    %129 = arith.subf %125, %128 : vector<1x4xf32>
    %130 = math.exp %129 : vector<1x4xf32>
    %cst_87 = arith.constant dense<0.000000e+00> : vector<1xf32>
    %131 = vector.multi_reduction <add>, %130, %cst_87 [1] : vector<1x4xf32> to vector<1xf32>
    %132 = vector.shape_cast %131 : vector<1xf32> to vector<1x1xf32>
    %133 = vector.broadcast %132 : vector<1x1xf32> to vector<1x4xf32>
    %134 = arith.divf %130, %133 : vector<1x4xf32>
    %c6_88 = arith.constant 6 : index
    %c0_89 = arith.constant 0 : index
    %135 = vector.load %arg9[%c6_88, %c0_89] : memref<8x4xf32, #tpu.memory_space<vmem>>, vector<1x4xf32>
    tpu.vector_store %arg9[%c6_88, %c0_89], %134 {strides = array<i32>} : memref<8x4xf32, #tpu.memory_space<vmem>>, vector<1x4xf32>,
    %c7 = arith.constant 7 : index
    %c0_90 = arith.constant 0 : index
    %c0_91 = arith.constant 0 : index
    %136 = vector.load %arg5[%c7, %c0_90, %c0_91] : memref<8x256x4xbf16, #tpu.memory_space<vmem>>, vector<1x256x4xbf16>
    %137 = vector.shape_cast %136 : vector<1x256x4xbf16> to vector<256x4xbf16>
    %cst_92 = arith.constant dense<0.000000e+00> : vector<1x4xf32>
    %138 = tpu.matmul %15, %137, %cst_92 {dimension_numbers = #tpu.dot_dimension_numbers<[1], [0], [0], [1], [0, 0, 1, 1], [], []>} : vector<1x256xbf16>, vector<256x4xbf16>, vector<1x4xf32> -> vector<1x4xf32>
    %c7_93 = arith.constant 7 : index
    %c0_94 = arith.constant 0 : index
    %c0_95 = arith.constant 0 : index
    %139 = vector.load %arg6[%c7_93, %c0_94, %c0_95] : memref<8x1x4xf32, #tpu.memory_space<vmem>>, vector<1x1x4xf32>
    %140 = vector.shape_cast %139 : vector<1x1x4xf32> to vector<1x4xf32>
    %141 = arith.addf %138, %140 : vector<1x4xf32>
    %cst_96 = arith.constant dense<0xFF800000> : vector<1xf32>
    %142 = vector.multi_reduction <maximumf>, %141, %cst_96 [1] : vector<1x4xf32> to vector<1xf32>
    %143 = vector.shape_cast %142 : vector<1xf32> to vector<1x1xf32>
    %144 = vector.broadcast %143 : vector<1x1xf32> to vector<1x4xf32>
    %145 = arith.subf %141, %144 : vector<1x4xf32>
    %146 = math.exp %145 : vector<1x4xf32>
    %cst_97 = arith.constant dense<0.000000e+00> : vector<1xf32>
    %147 = vector.multi_reduction <add>, %146, %cst_97 [1] : vector<1x4xf32> to vector<1xf32>
    %148 = vector.shape_cast %147 : vector<1xf32> to vector<1x1xf32>
    %149 = vector.broadcast %148 : vector<1x1xf32> to vector<1x4xf32>
    %150 = arith.divf %146, %149 : vector<1x4xf32>
    %c7_98 = arith.constant 7 : index
    %c0_99 = arith.constant 0 : index
    %151 = vector.load %arg9[%c7_98, %c0_99] : memref<8x4xf32, #tpu.memory_space<vmem>>, vector<1x4xf32>
    tpu.vector_store %arg9[%c7_98, %c0_99], %150 {strides = array<i32>} : memref<8x4xf32, #tpu.memory_space<vmem>>, vector<1x4xf32>,
    return
  }
}

</mosaic_0001>

<bundles_post_ra>
// kernel: simple_a2c_forward.1
= control target key start
LH: loop header
LB: loop body
LE: loop exit
PB: predicated region body
PF: predicated region fallthrough
CT: control target
= control target key end

     0   :  { %vm416_vm0 = vcmask 24576   ;;  %s3462_s1 = inlined_call_operand.vmem [shape: bf16[128,128], index: 1, kind: input, shape index: {}]   ;;  %s3463_s3 = inlined_call_operand.vmem [shape: bf16[128,256], index: 3, kind: input, shape index: {}]   ;;  %s3464_s0 = inlined_call_operand.vmem [shape: f32[1,128], index: 0, kind: input, shape index: {}]   ;;  %s3465_s5 = inlined_call_operand.vmem [shape: bf16[8,256,4], index: 5, kind: input, shape index: {}]   ;;  %s3466_s2 = inlined_call_operand.vmem [shape: f32[1,128], index: 2, kind: input, shape index: {}]   ;;  %s3467_s4 = inlined_call_operand.vmem [shape: f32[1,256], index: 4, kind: input, shape index: {}]   ;;  %s3468_s7 = inlined_call_operand.vmem [shape: f32[8,256], index: 7, kind: input, shape index: {}]   ;;  %s3469_s6 = inlined_call_operand.vmem [shape: f32[8,1,4], index: 6, kind: input, shape index: {}]   ;;  %s3470_s9 = inlined_call_operand.vmem [shape: f32[8,4], index: 9, kind: output, shape index: {0}]   ;;  %s3471_s8 = inlined_call_operand.vmem [shape: f32[8,1], index: 8, kind: input, shape index: {}]   ;;  %s3472_s10 = inlined_call_operand.vmem [shape: f32[8,1], index: 10, kind: output, shape index: {1}]  }
   0x1   :  { %v2570_v0 = vld [vmem:[%s3462_s1 + $0x38] sm:$0xff]  ;;  %v2569_v1 = vld [vmem:[%s3462_s1 + $0x30] sm:$0xff]  ;;  %v1806_v7 = vld [vmem:[%s3463_s3 + $0x60] sm:$0xf] }
   0x2   :  { %101 = vmatpush.bf16.msra.mxu0 %v2570_v0  ;;  %v1814_v2 = vld [vmem:[%s3463_s3 + $0x70] sm:$0xf]  ;;  %v2586_v3 = vld [vmem:[%s3463_s3 + $0x74] sm:$0xf0]  ;;  %v2585_v4 = vld [vmem:[%s3463_s3 + $0x74] sm:$0xf] }
   0x3   :  { %v1815_v5 = vor.u32 %v2586_v3, %v1814_v2  ;;  %v1816_v6 = vld [vmem:[%s3463_s3 + $0x78] sm:$0xf0]  ;;  %v2584_v8 = vld [vmem:[%s3463_s3 + $0x64] sm:$0xf0]  ;;  %v2583_v10 = vld [vmem:[%s3463_s3 + $0x64] sm:$0xf] }
   0x4   :  { %v1819_v9 = vor.u32 %v2585_v4, %v1816_v6  ;;  %v1808_v11 = vld [vmem:[%s3463_s3 + $0x68] sm:$0xf0]  ;;  %v1807_v13 = vor.u32 %v2584_v8, %v1806_v7  ;;  %v1798_v15 = vld [vmem:[%s3463_s3 + $0x50] sm:$0xf]  ;;  %v2582_v16 = vld [vmem:[%s3463_s3 + $0x54] sm:$0xf0] }
   0x5   :  { %v2568_v12 = vld [vmem:[%s3462_s1 + $0x28] sm:$0xff]  ;;  %218 = vmatpush.bf16.msra.mxu1 %v1815_v5  ;;  %v1811_v14 = vor.u32 %v2583_v10, %v1808_v11  ;;  %v2581_v17 = vld [vmem:[%s3463_s3 + $0x54] sm:$0xf]  ;;  %v1800_v18 = vld [vmem:[%s3463_s3 + $0x58] sm:$0xf0]  ;;  %v1799_v20 = vor.u32 %v2582_v16, %v1798_v15 }
   0x6   :  { %102 = vmatpush.bf16.msra.mxu0 %v2569_v1  ;;  %231 = vmatpush.bf16.msra.mxu2 %v1819_v9  ;;  %v2567_v19 = vld [vmem:[%s3462_s1 + $0x20] sm:$0xff]  ;;  %v1803_v21 = vor.u32 %v2581_v17, %v1800_v18  ;;  %v2580_v23 = vld [vmem:[%s3463_s3 + $0x44] sm:$0xf0]  ;;  %v1792_v25 = vld [vmem:[%s3463_s3 + $0x48] sm:$0xf0] }
   0x7   :  { %v1790_v22 = vld [vmem:[%s3463_s3 + $0x40] sm:$0xf]  ;;  %v2579_v24 = vld [vmem:[%s3463_s3 + $0x44] sm:$0xf]  ;;  %v2566_v26 = vld [vmem:[%s3462_s1 + $0x18] sm:$0xff] }
   0x8   :  { %v1791_v27 = vor.u32 %v2580_v23, %v1790_v22  ;;  %v1795_v28 = vor.u32 %v2579_v24, %v1792_v25  ;;  %v1782_v29 = vld [vmem:[%s3463_s3 + $0x30] sm:$0xf]  ;;  %v2578_v30 = vld [vmem:[%s3463_s3 + $0x34] sm:$0xf0]  ;;  %v2577_v31 = vld [vmem:[%s3463_s3 + $0x34] sm:$0xf] }
   0x9   :  { %219 = vmatpush.bf16.msra.mxu1 %v1807_v13  ;;  %v1784_v32 = vld [vmem:[%s3463_s3 + $0x38] sm:$0xf0]  ;;  %v2565_v33 = vld [vmem:[%s3462_s1 + $0x10] sm:$0xff]  ;;  %v1783_v34 = vor.u32 %v2578_v30, %v1782_v29  ;;  %v1774_v36 = vld [vmem:[%s3463_s3 + $0x20] sm:$0xf] }
   0xa   :  { %103 = vmatpush.bf16.msra.mxu0 %v2568_v12  ;;  %232 = vmatpush.bf16.msra.mxu2 %v1811_v14  ;;  %v1787_v35 = vor.u32 %v2577_v31, %v1784_v32  ;;  %v2576_v37 = vld [vmem:[%s3463_s3 + $0x24] sm:$0xf0]  ;;  %v2575_v38 = vld [vmem:[%s3463_s3 + $0x24] sm:$0xf]  ;;  %v1776_v39 = vld [vmem:[%s3463_s3 + $0x28] sm:$0xf0] }
   0xb   :  { %v2564_v40 = vld [vmem:[%s3462_s1 + $0x8] sm:$0xff]  ;;  %v1775_v41 = vor.u32 %v2576_v37, %v1774_v36  ;;  %v1779_v42 = vor.u32 %v2575_v38, %v1776_v39  ;;  %v2563_v43 = vld [vmem:[%s3462_s1] sm:$0xff]  ;;  %v1766_v46 = vld [vmem:[%s3463_s3 + $0x10] sm:$0xf] }
   0xc   :  { %v34_v44 = vld [vmem:[%s3464_s0] sm:$0x1]  ;;  %v2574_v47 = vld [vmem:[%s3463_s3 + $0x14] sm:$0xf0]  ;;  %v2573_v48 = vld [vmem:[%s3463_s3 + $0x14] sm:$0xf] }
   0xd   :  { %220 = vmatpush.bf16.msra.mxu1 %v1799_v20  ;;  %v35_v45 = vpack.c.bf16 %v34_v44, %v34_v44  ;;  %v1767_v49 = vor.u32 %v2574_v47, %v1766_v46  ;;  %v1768_v50 = vld [vmem:[%s3463_s3 + $0x18] sm:$0xf0]  ;;  %v1758_v52 = vld [vmem:[%s3463_s3] sm:$0xf]  ;;  %v2572_v53 = vld [vmem:[%s3463_s3 + $0x4] sm:$0xf0] }
   0xe   :  { %104 = vmatpush.bf16.msra.mxu0 %v2567_v19  ;;  %233 = vmatpush.bf16.msra.mxu2 %v1803_v21  ;;  %v1771_v51 = vor.u32 %v2573_v48, %v1768_v50  ;;  %v2571_v54 = vld [vmem:[%s3463_s3 + $0x4] sm:$0xf]  ;;  %v1759_v55 = vor.u32 %v2572_v53, %v1758_v52  ;;  %v1760_v56 = vld [vmem:[%s3463_s3 + $0x8] sm:$0xf0]  ;;  %v2594_v58 = vld [vmem:[%s3465_s5 + $0x38] sm:$0xff] }
   0xf   :  { %v1763_v57 = vor.u32 %v2571_v54, %v1760_v56  ;;  %v2610_v59 = vld [vmem:[%s3465_s5 + $0xb8] sm:$0xff]  ;;  %390 = vmatpush.bf16.msra.mxu3 %v2594_v58  ;;  %v2593_v62 = vld [vmem:[%s3465_s5 + $0x30] sm:$0xff]  ;;  %v2592_v2 = vld [vmem:[%s3465_s5 + $0x28] sm:$0xff] }
  0x10   :  { %v2602_v60 = vld [vmem:[%s3465_s5 + $0x78] sm:$0xff]  ;;  %v2609_v63 = vld [vmem:[%s3465_s5 + $0xb0] sm:$0xff]  ;;  %v2608_v3 = vld [vmem:[%s3465_s5 + $0xa8] sm:$0xff] }
  0x11   :  { %221 = vmatpush.bf16.msra.mxu1 %v1791_v27  ;;  %v2618_v61 = vld [vmem:[%s3465_s5 + $0xf8] sm:$0xff]  ;;  %v2601_v0 = vld [vmem:[%s3465_s5 + $0x70] sm:$0xff]  ;;  %v2600_v4 = vld [vmem:[%s3465_s5 + $0x68] sm:$0xff] }
  0x12   :  { %105 = vmatpush.bf16.msra.mxu0 %v2566_v26  ;;  %234 = vmatpush.bf16.msra.mxu2 %v1795_v28  ;;  %v2617_v1 = vld [vmem:[%s3465_s5 + $0xf0] sm:$0xff]  ;;  %v2616_v5 = vld [vmem:[%s3465_s5 + $0xe8] sm:$0xff]  ;;  %v2591_v6 = vld [vmem:[%s3465_s5 + $0x20] sm:$0xff] }
  0x13   :  { %391 = vmatpush.bf16.msra.mxu3 %v2593_v62  ;;  %v2607_v7 = vld [vmem:[%s3465_s5 + $0xa0] sm:$0xff]  ;;  %v2590_v10 = vld [vmem:[%s3465_s5 + $0x18] sm:$0xff]  ;;  %v2589_v14 = vld [vmem:[%s3465_s5 + $0x10] sm:$0xff] }
  0x14   :  { %v2599_v8 = vld [vmem:[%s3465_s5 + $0x60] sm:$0xff]  ;;  %v2606_v11 = vld [vmem:[%s3465_s5 + $0x98] sm:$0xff]  ;;  %v2605_v15 = vld [vmem:[%s3465_s5 + $0x90] sm:$0xff] }
  0x15   :  { %222 = vmatpush.bf16.msra.mxu1 %v1783_v34  ;;  %v2615_v9 = vld [vmem:[%s3465_s5 + $0xe0] sm:$0xff]  ;;  %v2598_v12 = vld [vmem:[%s3465_s5 + $0x58] sm:$0xff]  ;;  %v2597_v16 = vld [vmem:[%s3465_s5 + $0x50] sm:$0xff] }
  0x16   :  { %106 = vmatpush.bf16.msra.mxu0 %v2565_v33  ;;  %235 = vmatpush.bf16.msra.mxu2 %v1787_v35  ;;  %v2614_v13 = vld [vmem:[%s3465_s5 + $0xd8] sm:$0xff]  ;;  %v2613_v17 = vld [vmem:[%s3465_s5 + $0xd0] sm:$0xff]  ;;  %v52_v18 = vld [vmem:[%s3466_s2] sm:$0x1] }
  0x17   :  { %392 = vmatpush.bf16.msra.mxu3 %v2592_v2  ;;  %v2588_v19 = vld [vmem:[%s3465_s5 + $0x8] sm:$0xff]  ;;  %v2587_v25 = vld [vmem:[%s3465_s5] sm:$0xff]  ;;  %v2626_v28 = vld [vmem:[%s3465_s5 + $0x138] sm:$0xff] }
  0x18   :  { %v2604_v20 = vld [vmem:[%s3465_s5 + $0x88] sm:$0xff]  ;;  %v2603_v26 = vld [vmem:[%s3465_s5 + $0x80] sm:$0xff]  ;;  %v2642_v29 = vld [vmem:[%s3465_s5 + $0x1b8] sm:$0xff] }
  0x19   :  { %223 = vmatpush.bf16.msra.mxu1 %v1775_v41  ;;  %v2596_v21 = vld [vmem:[%s3465_s5 + $0x48] sm:$0xff]  ;;  %v2595_v31 = vld [vmem:[%s3465_s5 + $0x40] sm:$0xff]  ;;  %v2634_v33 = vld [vmem:[%s3465_s5 + $0x178] sm:$0xff] }
  0x1a   :  { %107 = vmatpush.bf16.msra.mxu0 %v2564_v40  ;;  %236 = vmatpush.bf16.msra.mxu2 %v1779_v42  ;;  %v2612_v22 = vld [vmem:[%s3465_s5 + $0xc8] sm:$0xff]  ;;  %v2611_v32 = vld [vmem:[%s3465_s5 + $0xc0] sm:$0xff]  ;;  %v2650_v34 = vld [vmem:[%s3465_s5 + $0x1f8] sm:$0xff] }
  0x1b   :  { %393 = vmatpush.bf16.msra.mxu3 %v2591_v6  ;;  %v2625_v36 = vld [vmem:[%s3465_s5 + $0x130] sm:$0xff]  ;;  %v2624_v40 = vld [vmem:[%s3465_s5 + $0x128] sm:$0xff]  ;;  %v2623_v44 = vld [vmem:[%s3465_s5 + $0x120] sm:$0xff] }
  0x1c   :  { %v2641_v37 = vld [vmem:[%s3465_s5 + $0x1b0] sm:$0xff]  ;;  %v2640_v41 = vld [vmem:[%s3465_s5 + $0x1a8] sm:$0xff]  ;;  %v2631_v46 = vld [vmem:[%s3465_s5 + $0x160] sm:$0xff] }
  0x1d   :  { %224 = vmatpush.bf16.msra.mxu1 %v1767_v49  ;;  %v2633_v38 = vld [vmem:[%s3465_s5 + $0x170] sm:$0xff]  ;;  %v2632_v42 = vld [vmem:[%s3465_s5 + $0x168] sm:$0xff]  ;;  %v2647_v47 = vld [vmem:[%s3465_s5 + $0x1e0] sm:$0xff] }
  0x1e   :  { %108 = vmatpush.bf16.msra.mxu0 %v2563_v43  ;;  %237 = vmatpush.bf16.msra.mxu2 %v1771_v51  ;;  %v2649_v39 = vld [vmem:[%s3465_s5 + $0x1f0] sm:$0xff]  ;;  %v2648_v43 = vld [vmem:[%s3465_s5 + $0x1e8] sm:$0xff]  ;;  %v2622_v48 = vld [vmem:[%s3465_s5 + $0x118] sm:$0xff] }
  0x1f   :  { %394 = vmatpush.bf16.msra.mxu3 %v2590_v10  ;;  %v2638_v49 = vld [vmem:[%s3465_s5 + $0x198] sm:$0xff]  ;;  %v2621_v50 = vld [vmem:[%s3465_s5 + $0x110] sm:$0xff]  ;;  %v2620_v54 = vld [vmem:[%s3465_s5 + $0x108] sm:$0xff] }
  0x20   :  { %v2637_v51 = vld [vmem:[%s3465_s5 + $0x190] sm:$0xff]  ;;  %v2630_v52 = vld [vmem:[%s3465_s5 + $0x158] sm:$0xff]  ;;  %v2619_v58 = vld [vmem:[%s3465_s5 + $0x100] sm:$0xff] }
  0x21   :  { %109 = vmatmul.bf16.vlgmr.msra.gmra.mxu0 %v35_v45  ;;  %225 = vmatpush.bf16.msra.mxu1 %v1759_v55  ;;  %v2639_v45 = vld [vmem:[%s3465_s5 + $0x1a0] sm:$0xff]  ;;  %v2646_v53 = vld [vmem:[%s3465_s5 + $0x1d8] sm:$0xff]  ;;  %v2636_v55 = vld [vmem:[%s3465_s5 + $0x188] sm:$0xff] }
  0x22   :  { %238 = vmatpush.bf16.msra.mxu2 %v1763_v57  ;;  %403 = vmatpush.bf16.msrb.mxu0 %v2602_v60  ;;  %v2629_v56 = vld [vmem:[%s3465_s5 + $0x150] sm:$0xff]  ;;  %v2628_v60 = vld [vmem:[%s3465_s5 + $0x148] sm:$0xff]  ;;  %v2627_v62 = vld [vmem:[%s3465_s5 + $0x140] sm:$0xff] }
  0x23   :  { %395 = vmatpush.bf16.msra.mxu3 %v2589_v14  ;;  %v2645_v57 = vld [vmem:[%s3465_s5 + $0x1d0] sm:$0xff]  ;;  %v2658_v6 = vld [vmem:[%s3465_s5 + $0x238] sm:$0xff] }
  0x25   :  { %573 = vmatpush.bf16.msrb.mxu1 %v2610_v59  ;;  %v2635_v59 = vld [vmem:[%s3465_s5 + $0x180] sm:$0xff] }
  0x26   :  { %586 = vmatpush.bf16.msrb.mxu2 %v2618_v61  ;;  %404 = vmatpush.bf16.msrb.mxu0 %v2601_v0  ;;  %v2644_v61 = vld [vmem:[%s3465_s5 + $0x1c8] sm:$0xff]  ;;  %v132_v0 = vld [vmem:[%s3467_s4] sm:$0x3] }
  0x27   :  { %396 = vmatpush.bf16.msra.mxu3 %v2588_v19  ;;  %v249_v19 = vld [vmem:[%s3468_s7 + $0x8] sm:$0xff] }
  0x29   :  { %574 = vmatpush.bf16.msrb.mxu1 %v2609_v63  ;;  %v2643_v63 = vld [vmem:[%s3465_s5 + $0x1c0] sm:$0xff] }
  0x2a   :  { %587 = vmatpush.bf16.msrb.mxu2 %v2617_v1  ;;  %405 = vmatpush.bf16.msrb.mxu0 %v2600_v4  ;;  %v214_v1 = vperm.slane %v132_v0, 0 }
  0x2b   :  { %397 = vmatpush.bf16.msra.mxu3 %v2587_v25 }
  0x2d   :  { %575 = vmatpush.bf16.msrb.mxu1 %v2608_v3 }
  0x2e   :  { %588 = vmatpush.bf16.msrb.mxu2 %v2616_v5  ;;  %406 = vmatpush.bf16.msrb.mxu0 %v2599_v8  ;;  %v215_v5 = vperm.slane %v132_v0, 1  ;;  %v2696_v0 = vld [vmem:[%s3465_s5 + $0x368] sm:$0xff] }
  0x2f   :  { %755 = vmatpush.bf16.msrb.mxu3 %v2626_v28  ;;  %v2681_v28 = vld [vmem:[%s3465_s5 + $0x2f0] sm:$0xff] }
  0x31   :  { %576 = vmatpush.bf16.msrb.mxu1 %v2607_v7  ;;  %v2674_v7 = vld [vmem:[%s3465_s5 + $0x2b8] sm:$0xff] }
  0x32   :  { %589 = vmatpush.bf16.msrb.mxu2 %v2615_v9  ;;  %407 = vmatpush.bf16.msrb.mxu0 %v2598_v12  ;;  %v2657_v12 = vld [vmem:[%s3465_s5 + $0x230] sm:$0xff] }
  0x33   :  { %756 = vmatpush.bf16.msrb.mxu3 %v2625_v36  ;;  %v2663_v36 = vld [vmem:[%s3465_s5 + $0x260] sm:$0xff] }
  0x35   :  { %577 = vmatpush.bf16.msrb.mxu1 %v2606_v11 }
  0x36   :  { %590 = vmatpush.bf16.msrb.mxu2 %v2614_v13  ;;  %408 = vmatpush.bf16.msrb.mxu0 %v2597_v16  ;;  %v2673_v13 = vld [vmem:[%s3465_s5 + $0x2b0] sm:$0xff]  ;;  %v248_v16 = vld [vmem:[%s3468_s7] sm:$0xff] }
  0x37   :  { %757 = vmatpush.bf16.msrb.mxu3 %v2624_v40  ;;  %v2662_v40 = vld [vmem:[%s3465_s5 + $0x258] sm:$0xff] }
  0x39   :  { %578 = vmatpush.bf16.msrb.mxu1 %v2605_v15 }
  0x3a   :  { %591 = vmatpush.bf16.msrb.mxu2 %v2613_v17  ;;  %409 = vmatpush.bf16.msrb.mxu0 %v2596_v21  ;;  %v2666_v17 = vld [vmem:[%s3465_s5 + $0x278] sm:$0xff] }
  0x3b   :  { %758 = vmatpush.bf16.msrb.mxu3 %v2623_v44  ;;  %v2661_v44 = vld [vmem:[%s3465_s5 + $0x250] sm:$0xff] }
  0x3d   :  { %579 = vmatpush.bf16.msrb.mxu1 %v2604_v20 }
  0x3e   :  { %592 = vmatpush.bf16.msrb.mxu2 %v2612_v22  ;;  %410 = vmatpush.bf16.msrb.mxu0 %v2595_v31  ;;  %v2656_v22 = vld [vmem:[%s3465_s5 + $0x228] sm:$0xff]  ;;  %v2671_v31 = vld [vmem:[%s3465_s5 + $0x2a0] sm:$0xff] }
  0x3f   :  { %759 = vmatpush.bf16.msrb.mxu3 %v2622_v48  ;;  %v2690_v48 = vld [vmem:[%s3465_s5 + $0x338] sm:$0xff] }
  0x41   :  { %580 = vmatpush.bf16.msrb.mxu1 %v2603_v26 }
  0x42   :  { %593 = vmatpush.bf16.msrb.mxu2 %v2611_v32  ;;  %768 = vmatpush.bf16.msra.mxu0 %v2634_v33  ;;  %v2664_v32 = vld [vmem:[%s3465_s5 + $0x268] sm:$0xff] }
  0x43   :  { %760 = vmatpush.bf16.msrb.mxu3 %v2621_v50  ;;  %v2680_v33 = vld [vmem:[%s3465_s5 + $0x2e8] sm:$0xff] }
  0x44   :  { %v2660_v50 = vld [vmem:[%s3465_s5 + $0x248] sm:$0xff] }
  0x46   :  { %769 = vmatpush.bf16.msra.mxu0 %v2633_v38  ;;  %v2653_v38 = vld [vmem:[%s3465_s5 + $0x210] sm:$0xff] }
  0x47   :  { %761 = vmatpush.bf16.msrb.mxu3 %v2620_v54  ;;  %v2659_v54 = vld [vmem:[%s3465_s5 + $0x240] sm:$0xff] }
  0x4a   :  { %770 = vmatpush.bf16.msra.mxu0 %v2632_v42  ;;  %v2652_v42 = vld [vmem:[%s3465_s5 + $0x208] sm:$0xff] }
  0x4b   :  { %762 = vmatpush.bf16.msrb.mxu3 %v2619_v58  ;;  %v2688_v58 = vld [vmem:[%s3465_s5 + $0x328] sm:$0xff] }
  0x4e   :  { %771 = vmatpush.bf16.msra.mxu0 %v2631_v46  ;;  %v2651_v46 = vld [vmem:[%s3465_s5 + $0x200] sm:$0xff] }
  0x52   :  { %772 = vmatpush.bf16.msra.mxu0 %v2630_v52  ;;  %v2689_v52 = vld [vmem:[%s3465_s5 + $0x330] sm:$0xff] }
  0x56   :  { %773 = vmatpush.bf16.msra.mxu0 %v2629_v56  ;;  %v2698_v56 = vld [vmem:[%s3465_s5 + $0x378] sm:$0xff] }
  0x5a   :  { %774 = vmatpush.bf16.msra.mxu0 %v2628_v60  ;;  %v2697_v60 = vld [vmem:[%s3465_s5 + $0x370] sm:$0xff] }
  0x5e   :  { %775 = vmatpush.bf16.msra.mxu0 %v2627_v62  ;;  %v2687_v62 = vld [vmem:[%s3465_s5 + $0x320] sm:$0xff] }
  0x9e   :  { %v110_v23 = vpop.f32.mrf.mxu0 }
  0x9f   :  { %v111_v24 = vadd.f32 %v110_v23, %v52_v18  ;;  %v2682_v18 = vld [vmem:[%s3465_s5 + $0x2f8] sm:$0xff]  ;;  %v2672_v23 = vld [vmem:[%s3465_s5 + $0x2a8] sm:$0xff] }
  0xa1   :  { %v114_v27 = vmax.f32 %v111_v24, 0.0 }
  0xa3   :  { %v115_v30 = vpack.c.bf16 %v114_v27, %v114_v27  ;;  %v2665_v27 = vld [vmem:[%s3465_s5 + $0x270] sm:$0xff] }
  0xa5   :  { %226 = vmatmul.bf16.vlgmr.msra.gmra.mxu1 %v115_v30  ;;  %239 = vmatmul.bf16.vlgmr.msra.gmra.mxu2 %v115_v30  ;;  %v2655_v30 = vld [vmem:[%s3465_s5 + $0x220] sm:$0xff] }
  0xa6   :  { %v112_v35 = vpop.f32.mrf.mxu0  ;;  %937 = vmatpush.bf16.msra.mxu1 %v2642_v29  ;;  %950 = vmatpush.bf16.msra.mxu2 %v2650_v34  ;;  %v2654_v34 = vld [vmem:[%s3465_s5 + $0x218] sm:$0xff] }
  0xa7   :  { %v2670_v35 = vld [vmem:[%s3465_s5 + $0x298] sm:$0xff] }
  0xaa   :  { %938 = vmatpush.bf16.msra.mxu1 %v2641_v37  ;;  %951 = vmatpush.bf16.msra.mxu2 %v2649_v39  ;;  %v2679_v37 = vld [vmem:[%s3465_s5 + $0x2e0] sm:$0xff]  ;;  %v2669_v39 = vld [vmem:[%s3465_s5 + $0x290] sm:$0xff] }
  0xae   :  { %939 = vmatpush.bf16.msra.mxu1 %v2640_v41  ;;  %952 = vmatpush.bf16.msra.mxu2 %v2648_v43  ;;  %v2678_v41 = vld [vmem:[%s3465_s5 + $0x2d8] sm:$0xff]  ;;  %v2668_v43 = vld [vmem:[%s3465_s5 + $0x288] sm:$0xff] }
  0xb2   :  { %940 = vmatpush.bf16.msra.mxu1 %v2639_v45  ;;  %953 = vmatpush.bf16.msra.mxu2 %v2647_v47  ;;  %v2677_v45 = vld [vmem:[%s3465_s5 + $0x2d0] sm:$0xff]  ;;  %v2667_v47 = vld [vmem:[%s3465_s5 + $0x280] sm:$0xff] }
  0xb6   :  { %941 = vmatpush.bf16.msra.mxu1 %v2638_v49  ;;  %954 = vmatpush.bf16.msra.mxu2 %v2646_v53  ;;  %v2706_v49 = vld [vmem:[%s3465_s5 + $0x3b8] sm:$0xff]  ;;  %v2705_v53 = vld [vmem:[%s3465_s5 + $0x3b0] sm:$0xff] }
  0xba   :  { %942 = vmatpush.bf16.msra.mxu1 %v2637_v51  ;;  %955 = vmatpush.bf16.msra.mxu2 %v2645_v57  ;;  %v2676_v51 = vld [vmem:[%s3465_s5 + $0x2c8] sm:$0xff]  ;;  %v2714_v57 = vld [vmem:[%s3465_s5 + $0x3f8] sm:$0xff] }
  0xbe   :  { %943 = vmatpush.bf16.msra.mxu1 %v2636_v55  ;;  %956 = vmatpush.bf16.msra.mxu2 %v2644_v61  ;;  %v2675_v55 = vld [vmem:[%s3465_s5 + $0x2c0] sm:$0xff]  ;;  %v2713_v61 = vld [vmem:[%s3465_s5 + $0x3f0] sm:$0xff] }
  0xc2   :  { %944 = vmatpush.bf16.msra.mxu1 %v2635_v59  ;;  %957 = vmatpush.bf16.msra.mxu2 %v2643_v63  ;;  %v2704_v59 = vld [vmem:[%s3465_s5 + $0x3a8] sm:$0xff]  ;;  %v2703_v63 = vld [vmem:[%s3465_s5 + $0x3a0] sm:$0xff] }
 0x122   :  { %v227_v2 = vpop.f32.mrf.mxu1 }
 0x123   :  { %v228_v3 = vadd.f32 %v227_v2, %v214_v1  ;;  %v2712_v1 = vld [vmem:[%s3465_s5 + $0x3e8] sm:$0xff]  ;;  %v2686_v2 = vld [vmem:[%s3465_s5 + $0x318] sm:$0xff] }
 0x125   :  { %v244_v4 = vmax.f32 %v228_v3, 0.0  ;;  %v2702_v3 = vld [vmem:[%s3465_s5 + $0x398] sm:$0xff] }
 0x127   :  { %v3129_v8 = vpack.c.bf16 %v244_v4, %v244_v4  ;;  %v250_v14 = vperm.slane %v244_v4, 0  ;;  %v2695_v4 = vld [vmem:[%s3465_s5 + $0x360] sm:$0xff] }
 0x128   :  { %v240_v9 = vpop.f32.mrf.mxu2 }
 0x129   :  { %v241_v10 = vadd.f32 %v240_v9, %v215_v5  ;;  %398 = vmatmul.bf16.vlgmr.msra.gmra.mxu3 %v3129_v8  ;;  %581 = vmatmul.bf16.vlgmr.msrb.gmra.mxu1 %v3129_v8  ;;  %v252_v24 = vmul.f32 %v250_v14, %v248_v16  ;;  %v2711_v5 = vld [vmem:[%s3465_s5 + $0x3e0] sm:$0xff]  ;;  %v2694_v9 = vld [vmem:[%s3465_s5 + $0x358] sm:$0xff]  ;;  %v2709_v14 = vld [vmem:[%s3465_s5 + $0x3d0] sm:$0xff] }
 0x12a   :  { %1119 = vmatpush.bf16.msra.mxu3 %v2658_v6  ;;  %1301 = vmatpush.bf16.msrb.mxu1 %v2674_v7  ;;  %v229_v11 = vpop.f32.mrf.mxu1  ;;  %v2685_v6 = vld [vmem:[%s3465_s5 + $0x310] sm:$0xff]  ;;  %v2699_v16 = vld [vmem:[%s3465_s5 + $0x380] sm:$0xff] }
 0x12b   :  { %v245_v15 = vmax.f32 %v241_v10, 0.0  ;;  %v2701_v7 = vld [vmem:[%s3465_s5 + $0x390] sm:$0xff]  ;;  %v2710_v10 = vld [vmem:[%s3465_s5 + $0x3d8] sm:$0xff]  ;;  %v2684_v11 = vld [vmem:[%s3465_s5 + $0x308] sm:$0xff] }
 0x12d   :  { %v3151_v20 = vpack.c.bf16 %v245_v15, %v245_v15  ;;  %v251_v21 = vperm.slane %v245_v15, 0  ;;  %v2683_v15 = vld [vmem:[%s3465_s5 + $0x300] sm:$0xff] }
 0x12e   :  { %1120 = vmatpush.bf16.msra.mxu3 %v2657_v12  ;;  %1302 = vmatpush.bf16.msrb.mxu1 %v2673_v13  ;;  %v2700_v12 = vld [vmem:[%s3465_s5 + $0x388] sm:$0xff]  ;;  %v2693_v13 = vld [vmem:[%s3465_s5 + $0x350] sm:$0xff] }
 0x12f   :  { %411 = vmatmul.bf16.vlgmr.msrb.gmra.mxu0 %v3151_v20  ;;  %594 = vmatmul.bf16.vlgmr.msrb.gmra.mxu2 %v3151_v20  ;;  %v253_v25 = vmul.f32 %v251_v21, %v249_v19  ;;  %v2691_v19 = vld [vmem:[%s3465_s5 + $0x340] sm:$0xff] }
 0x130   :  { %1132 = vmatpush.bf16.msrb.mxu0 %v2666_v17  ;;  %1314 = vmatpush.bf16.msrb.mxu2 %v2682_v18  ;;  %v242_v26 = vpop.f32.mrf.mxu2  ;;  %v2692_v17 = vld [vmem:[%s3465_s5 + $0x348] sm:$0xff]  ;;  %v2707_v21 = vld [vmem:[%s3465_s5 + $0x3c0] sm:$0xff] }
 0x131   :  { %v3167_v29 = vadd.f32 %v253_v25, %v252_v24  ;;  %v2708_v18 = vld [vmem:[%s3465_s5 + $0x3c8] sm:$0xff] }
 0x132   :  { %1121 = vmatpush.bf16.msra.mxu3 %v2656_v22  ;;  %1303 = vmatpush.bf16.msrb.mxu1 %v2672_v23  ;;  %v293_v23 = vld [vmem:[%s3469_s6] sm:$0x1] }
 0x134   :  { %1133 = vmatpush.bf16.msrb.mxu0 %v2665_v27  ;;  %1315 = vmatpush.bf16.msrb.mxu2 %v2681_v28 }
 0x136   :  { %1122 = vmatpush.bf16.msra.mxu3 %v2655_v30  ;;  %1304 = vmatpush.bf16.msrb.mxu1 %v2671_v31 }
 0x138   :  { %1134 = vmatpush.bf16.msrb.mxu0 %v2664_v32  ;;  %1316 = vmatpush.bf16.msrb.mxu2 %v2680_v33 }
 0x139   :  { %763 = vmatmul.bf16.vlgmr.msrb.gmra.mxu3 %v3129_v8  ;;  %945 = vmatmul.bf16.vlgmr.msra.gmra.mxu1 %v3129_v8 }
 0x13a   :  { %1123 = vmatpush.bf16.msra.mxu3 %v2654_v34  ;;  %1305 = vmatpush.bf16.msrb.mxu1 %v2670_v35 }
 0x13c   :  { %1135 = vmatpush.bf16.msrb.mxu0 %v2663_v36  ;;  %1317 = vmatpush.bf16.msrb.mxu2 %v2679_v37 }
 0x13e   :  { %1124 = vmatpush.bf16.msra.mxu3 %v2653_v38  ;;  %1306 = vmatpush.bf16.msrb.mxu1 %v2669_v39  ;;  %v2013_v38 = vld [vmem:[%s3469_s6 + $0x2] sm:$0x1] }
 0x13f   :  { %776 = vmatmul.bf16.vlgmr.msra.gmra.mxu0 %v3151_v20  ;;  %958 = vmatmul.bf16.vlgmr.msra.gmra.mxu2 %v3151_v20 }
 0x140   :  { %1136 = vmatpush.bf16.msrb.mxu0 %v2662_v40  ;;  %1318 = vmatpush.bf16.msrb.mxu2 %v2678_v41 }
 0x142   :  { %1125 = vmatpush.bf16.msra.mxu3 %v2652_v42  ;;  %1307 = vmatpush.bf16.msrb.mxu1 %v2668_v43 }
 0x144   :  { %1137 = vmatpush.bf16.msrb.mxu0 %v2661_v44  ;;  %1319 = vmatpush.bf16.msrb.mxu2 %v2677_v45  ;;  %v2110_v44 = vld [vmem:[%s3469_s6 + $0x3] sm:$0x1] }
 0x146   :  { %1126 = vmatpush.bf16.msra.mxu3 %v2651_v46  ;;  %1308 = vmatpush.bf16.msrb.mxu1 %v2667_v47 }
 0x148   :  { %1138 = vmatpush.bf16.msrb.mxu0 %v2660_v50  ;;  %1320 = vmatpush.bf16.msrb.mxu2 %v2676_v51 }
 0x149   :  { %1127 = vmatmul.bf16.vlgmr.msra.gmra.mxu3 %v3129_v8  ;;  %1309 = vmatmul.bf16.vlgmr.msrb.gmra.mxu1 %v3129_v8 }
 0x14a   :  { %1483 = vmatpush.bf16.msrb.mxu3 %v2690_v48  ;;  %1665 = vmatpush.bf16.msra.mxu1 %v2706_v49 }
 0x14c   :  { %1139 = vmatpush.bf16.msrb.mxu0 %v2659_v54  ;;  %1321 = vmatpush.bf16.msrb.mxu2 %v2675_v55  ;;  %v2207_v54 = vld [vmem:[%s3469_s6 + $0x4] sm:$0x1] }
 0x14e   :  { %1484 = vmatpush.bf16.msrb.mxu3 %v2689_v52  ;;  %1666 = vmatpush.bf16.msra.mxu1 %v2705_v53 }
 0x14f   :  { %1140 = vmatmul.bf16.vlgmr.msrb.gmra.mxu0 %v3151_v20  ;;  %1322 = vmatmul.bf16.vlgmr.msrb.gmra.mxu2 %v3151_v20 }
 0x150   :  { %1496 = vmatpush.bf16.msra.mxu0 %v2698_v56  ;;  %1678 = vmatpush.bf16.msra.mxu2 %v2714_v57 }
 0x152   :  { %1485 = vmatpush.bf16.msrb.mxu3 %v2688_v58  ;;  %1667 = vmatpush.bf16.msra.mxu1 %v2704_v59 }
 0x154   :  { %1497 = vmatpush.bf16.msra.mxu0 %v2697_v60  ;;  %1679 = vmatpush.bf16.msra.mxu2 %v2713_v61  ;;  %v2304_v60 = vld [vmem:[%s3469_s6 + $0x5] sm:$0x1] }
 0x156   :  { %1486 = vmatpush.bf16.msrb.mxu3 %v2687_v62  ;;  %1668 = vmatpush.bf16.msra.mxu1 %v2703_v63 }
 0x158   :  { %1498 = vmatpush.bf16.msra.mxu0 %v2696_v0  ;;  %1680 = vmatpush.bf16.msra.mxu2 %v2712_v1 }
 0x15a   :  { %1487 = vmatpush.bf16.msrb.mxu3 %v2686_v2  ;;  %1669 = vmatpush.bf16.msra.mxu1 %v2702_v3 }
 0x15c   :  { %1499 = vmatpush.bf16.msra.mxu0 %v2695_v4  ;;  %1681 = vmatpush.bf16.msra.mxu2 %v2711_v5 }
 0x15e   :  { %1488 = vmatpush.bf16.msrb.mxu3 %v2685_v6  ;;  %1670 = vmatpush.bf16.msra.mxu1 %v2701_v7  ;;  %v2401_v6 = vld [vmem:[%s3469_s6 + $0x6] sm:$0x1] }
 0x160   :  { %1500 = vmatpush.bf16.msra.mxu0 %v2694_v9  ;;  %1682 = vmatpush.bf16.msra.mxu2 %v2710_v10 }
 0x162   :  { %1489 = vmatpush.bf16.msrb.mxu3 %v2684_v11  ;;  %1671 = vmatpush.bf16.msra.mxu1 %v2700_v12  ;;  %v2498_v11 = vld [vmem:[%s3469_s6 + $0x7] sm:$0x1] }
 0x164   :  { %1501 = vmatpush.bf16.msra.mxu0 %v2693_v13  ;;  %1683 = vmatpush.bf16.msra.mxu2 %v2709_v14 }
 0x166   :  { %1490 = vmatpush.bf16.msrb.mxu3 %v2683_v15  ;;  %1672 = vmatpush.bf16.msra.mxu1 %v2699_v16 }
 0x168   :  { %1502 = vmatpush.bf16.msra.mxu0 %v2692_v17  ;;  %1684 = vmatpush.bf16.msra.mxu2 %v2708_v18 }
 0x169   :  { %1491 = vmatmul.bf16.vlgmr.msrb.gmra.mxu3 %v3129_v8  ;;  %1673 = vmatmul.bf16.vlgmr.msra.gmra.mxu1 %v3129_v8  ;;  %v1916_v8 = vld [vmem:[%s3469_s6 + $0x1] sm:$0x1] }
 0x16c   :  { %1503 = vmatpush.bf16.msra.mxu0 %v2691_v19  ;;  %1685 = vmatpush.bf16.msra.mxu2 %v2707_v21 }
 0x16f   :  { %1504 = vmatmul.bf16.vlgmr.msra.gmra.mxu0 %v3151_v20  ;;  %1686 = vmatmul.bf16.vlgmr.msra.gmra.mxu2 %v3151_v20 }
 0x1a6   :  { %v582_v22 = vpop.f32.mrf.mxu1 }
 0x1a7   :  { %v583_v31 = vadd.f32 %v1916_v8, %v582_v22 }
 0x1ac   :  { %v399_v24 = vpop.f32.mrf.mxu3  ;;  %v412_v25 = vpop.f32.mrf.mxu0 }
 0x1ad   :  { %v400_v26 = vadd.f32 %v399_v24, %v293_v23 }
 0x1ae   :  { %v584_v27 = vpop.f32.mrf.mxu1 }
 0x1af   :  { %v3346_v28 = vadd.f32 %v412_v25, %v400_v26 }
 0x1b1   :  { %v417_v30 = vsel %vm416_vm0, %v3346_v28, -inf }
 0x1b2   :  { %v595_v20 = vpop.f32.mrf.mxu2  ;;  %418 = vmax.xlane.f32.xlu0 %v417_v30 }
 0x1b3   :  { %v3353_v34 = vadd.f32 %v595_v20, %v583_v31 }
 0x1b4   :  { %v401_v32 = vpop.f32.mrf.mxu3  ;;  %v414_v33 = vpop.f32.mrf.mxu0 }
 0x1b5   :  { %v599_v36 = vsel %vm416_vm0, %v3353_v34, -inf }
 0x1b6   :  { %v946_v35 = vpop.f32.mrf.mxu1 }
 0x1b7   :  { %v947_v47 = vadd.f32 %v2110_v44, %v946_v35 }
 0x1ba   :  { %v597_v37 = vpop.f32.mrf.mxu2  ;;  %600 = vmax.xlane.f32.xlu0 %v599_v36 }
 0x1bc   :  { %v764_v39 = vpop.f32.mrf.mxu3  ;;  %v777_v40 = vpop.f32.mrf.mxu0 }
 0x1bd   :  { %v765_v41 = vadd.f32 %v2013_v38, %v764_v39 }
 0x1be   :  { %v948_v42 = vpop.f32.mrf.mxu1 }
 0x1bf   :  { %v778_v43 = vadd.f32 %v777_v40, %v765_v41 }
 0x1c1   :  { %v781_v45 = vsel %vm416_vm0, %v778_v43, -inf }
 0x1c2   :  { %v959_v46 = vpop.f32.mrf.mxu2  ;;  %782 = vmax.xlane.f32.xlu1 %v781_v45 }
 0x1c3   :  { %v960_v50 = vadd.f32 %v959_v46, %v947_v47 }
 0x1c4   :  { %v766_v48 = vpop.f32.mrf.mxu3  ;;  %v779_v49 = vpop.f32.mrf.mxu0 }
 0x1c5   :  { %v963_v52 = vsel %vm416_vm0, %v960_v50, -inf }
 0x1c6   :  { %v1310_v51 = vpop.f32.mrf.mxu1 }
 0x1c7   :  { %v1311_v62 = vadd.f32 %v2304_v60, %v1310_v51 }
 0x1ca   :  { %v961_v53 = vpop.f32.mrf.mxu2  ;;  %964 = vmax.xlane.f32.xlu1 %v963_v52 }
 0x1cc   :  { %v1128_v55 = vpop.f32.mrf.mxu3  ;;  %v1141_v57 = vpop.f32.mrf.mxu0 }
 0x1cd   :  { %v1129_v56 = vadd.f32 %v2207_v54, %v1128_v55 }
 0x1ce   :  { %v1312_v58 = vpop.f32.mrf.mxu1 }
 0x1cf   :  { %v1142_v59 = vadd.f32 %v1141_v57, %v1129_v56 }
 0x1d1   :  { %v1145_v61 = vsel %vm416_vm0, %v1142_v59, -inf }
 0x1d2   :  { %1146 = vmax.xlane.f32.xlu2 %v1145_v61  ;;  %v1323_v63 = vpop.f32.mrf.mxu2 }
 0x1d3   :  { %v1324_v1 = vadd.f32 %v1323_v63, %v1311_v62 }
 0x1d4   :  { %v1130_v0 = vpop.f32.mrf.mxu3  ;;  %v1143_v2 = vpop.f32.mrf.mxu0 }
 0x1d5   :  { %v1327_v3 = vsel %vm416_vm0, %v1324_v1, -inf }
 0x1da   :  { %1328 = vmax.xlane.f32.xlu2 %v1327_v3  ;;  %v1325_v4 = vpop.f32.mrf.mxu2 }
 0x1e6   :  { %v1674_v5 = vpop.f32.mrf.mxu1 }
 0x1e7   :  { %v1675_v14 = vadd.f32 %v2498_v11, %v1674_v5 }
 0x1ec   :  { %v1492_v7 = vpop.f32.mrf.mxu3  ;;  %v1505_v9 = vpop.f32.mrf.mxu0 }
 0x1ed   :  { %v1493_v10 = vadd.f32 %v2401_v6, %v1492_v7 }
 0x1ee   :  { %v1676_v12 = vpop.f32.mrf.mxu1 }
 0x1ef   :  { %v1506_v13 = vadd.f32 %v1505_v9, %v1493_v10 }
 0x1f1   :  { %v1509_v15 = vsel %vm416_vm0, %v1506_v13, -inf }
 0x1f2   :  { %v1687_v16 = vpop.f32.mrf.mxu2  ;;  %1510 = vmax.xlane.f32.xlu0 %v1509_v15 }
 0x1f3   :  { %v1688_v17 = vadd.f32 %v1687_v16, %v1675_v14 }
 0x1f4   :  { %v1494_v18 = vpop.f32.mrf.mxu3  ;;  %v1507_v19 = vpop.f32.mrf.mxu0 }
 0x1f5   :  { %v1691_v21 = vsel %vm416_vm0, %v1688_v17, -inf }
 0x1f6   :  { %1692 = vmax.xlane.f32.xlu1 %v1691_v21 }
 0x1fa   :  { %v1689_v22 = vpop.f32.mrf.mxu2 }
 0x225   :  { %v419_v23 = vpop.xlane.xlu0 %418 }
 0x226   :  { %v420_v24 = vsub.f32 %v3346_v28, %v419_v23 }
 0x228   :  { %v421_v25 = vmul.f32 1.442695, %v420_v24 }
 0x22a   :  { %2715 = vpow2.f32 %v421_v25 }
 0x22d   :  { %v601_v26 = vpop.xlane.xlu0 %600 }
 0x22e   :  { %v602_v27 = vsub.f32 %v3353_v34, %v601_v26 }
 0x230   :  { %v3383_v8 = vpop.eup %2715  ;;  %v603_v30 = vmul.f32 1.442695, %v602_v27 }
 0x231   :  { %v423_v20 = vsel %vm416_vm0, %v3383_v8, 0.0 }
 0x232   :  { %2717 = vpow2.f32 %v603_v30  ;;  %424 = vadd.xlane.f32.xlu2 %v423_v20 }
 0x235   :  { %v783_v31 = vpop.xlane.xlu1 %782 }
 0x236   :  { %v784_v32 = vsub.f32 %v778_v43, %v783_v31 }
 0x238   :  { %v3387_v33 = vpop.eup %2717  ;;  %v785_v35 = vmul.f32 1.442695, %v784_v32 }
 0x239   :  { %v605_v28 = vsel %vm416_vm0, %v3387_v33, 0.0 }
 0x23a   :  { %2719 = vpow2.f32 %v785_v35  ;;  %606 = vadd.xlane.f32.xlu0 %v605_v28 }
 0x23d   :  { %v965_v36 = vpop.xlane.xlu1 %964 }
 0x23e   :  { %v966_v34 = vsub.f32 %v960_v50, %v965_v36 }
 0x240   :  { %v3391_v37 = vpop.eup %2719  ;;  %v967_v38 = vmul.f32 1.442695, %v966_v34 }
 0x241   :  { %v787_v39 = vsel %vm416_vm0, %v3391_v37, 0.0 }
 0x242   :  { %2721 = vpow2.f32 %v967_v38  ;;  %788 = vadd.xlane.f32.xlu1 %v787_v39 }
 0x245   :  { %v1147_v40 = vpop.xlane.xlu2 %1146 }
 0x246   :  { %v1148_v41 = vsub.f32 %v1142_v59, %v1147_v40 }
 0x248   :  { %v3395_v42 = vpop.eup %2721  ;;  %v1149_v43 = vmul.f32 1.442695, %v1148_v41 }
 0x249   :  { %v969_v44 = vsel %vm416_vm0, %v3395_v42, 0.0 }
 0x24a   :  { %2723 = vpow2.f32 %v1149_v43  ;;  %970 = vadd.xlane.f32.xlu2 %v969_v44 }
 0x24d   :  { %v1329_v45 = vpop.xlane.xlu2 %1328 }
 0x24e   :  { %v1330_v46 = vsub.f32 %v1324_v1, %v1329_v45 }
 0x250   :  { %v3399_v47 = vpop.eup %2723  ;;  %v1331_v48 = vmul.f32 1.442695, %v1330_v46 }
 0x251   :  { %v1151_v49 = vsel %vm416_vm0, %v3399_v47, 0.0 }
 0x252   :  { %2725 = vpow2.f32 %v1331_v48  ;;  %1152 = vadd.xlane.f32.xlu0 %v1151_v49 }
 0x258   :  { %v3403_v50 = vpop.eup %2725 }
 0x259   :  { %v1333_v51 = vsel %vm416_vm0, %v3403_v50, 0.0 }
 0x25a   :  { %1334 = vadd.xlane.f32.xlu1 %v1333_v51 }
 0x262   :  { %255 = vadd.xlane.f32.xlu1 %v3167_v29 }
 0x265   :  { %v1511_v52 = vpop.xlane.xlu0 %1510 }
 0x266   :  { %v1512_v53 = vsub.f32 %v1506_v13, %v1511_v52 }
 0x268   :  { %v1513_v54 = vmul.f32 1.442695, %v1512_v53 }
 0x269   :  { %v1693_v55 = vpop.xlane.xlu1 %1692 }
 0x26a   :  { %2727 = vpow2.f32 %v1513_v54  ;;  %v1694_v56 = vsub.f32 %v1688_v17, %v1693_v55 }
 0x26c   :  { %v1695_v57 = vmul.f32 1.442695, %v1694_v56 }
 0x26e   :  { %2729 = vpow2.f32 %v1695_v57 }
 0x270   :  { %v3408_v58 = vpop.eup %2727 }
 0x271   :  { %v1515_v59 = vsel %vm416_vm0, %v3408_v58, 0.0 }
 0x272   :  { %1516 = vadd.xlane.f32.xlu2 %v1515_v59  ;;  %v257_v59 = vld [vmem:[%s3471_s8] sm:$0xff] }
 0x274   :  { %v3412_v60 = vpop.eup %2729 }
 0x275   :  { %v1697_v61 = vsel %vm416_vm0, %v3412_v60, 0.0 }
 0x276   :  { %1698 = vadd.xlane.f32.xlu0 %v1697_v61 }
 0x2a5   :  { %v425_v29 = vpop.xlane.xlu2 %424 }
 0x2a6   :  { %2731 = vrcp.f32 %v425_v29  ;;  %v437_v2 = vand.u32 2147483648, %v425_v29  ;;  %v435_v4 = vand.u32 2147483647, %v425_v29  ;;  %vm431_vm2 = vweird.f32 %v425_v29 }
 0x2a8   :  { %v438_v7 = vor.u32 1.1754944e-38, %v437_v2  ;;  %vm436_vm4 = vcmp.eq.f32.partialorder %v435_v4, 8.507059e+37 }
 0x2ac   :  { %v2732_v62 = vpop.eup %2731 }
 0x2ad   :  { %v427_v63 = vmul.f32 %v2732_v62, %v425_v29  ;;  %v607_v0 = vpop.xlane.xlu0 %606  ;;  %vm432_vm1 = vweird.f32 %v2732_v62 }
 0x2ae   :  { %2733 = vrcp.f32 %v607_v0  ;;  %vm433_vm3 = vmor %vm431_vm2, %vm432_vm1  ;;  %v619_v15 = vand.u32 2147483648, %v607_v0  ;;  %v617_v17 = vand.u32 2147483647, %v607_v0  ;;  %vm613_vm6 = vweird.f32 %v607_v0 }
 0x2af   :  { %v428_v1 = vsub.f32 1.0, %v427_v63 }
 0x2b0   :  { %v620_v21 = vor.u32 1.1754944e-38, %v619_v15  ;;  %vm618_vm8 = vcmp.eq.f32.partialorder %v617_v17, 8.507059e+37 }
 0x2b1   :  { %v429_v3 = vmul.f32 %v2732_v62, %v428_v1 }
 0x2b3   :  { %v430_v5 = vadd.f32 %v2732_v62, %v429_v3 }
 0x2b4   :  { %v2734_v6 = vpop.eup %2733 }
 0x2b5   :  { %v434_v9 = vsel %vm433_vm3, %v2732_v62, %v430_v5  ;;  %v609_v10 = vmul.f32 %v2734_v6, %v607_v0  ;;  %v789_v11 = vpop.xlane.xlu1 %788  ;;  %vm614_vm5 = vweird.f32 %v2734_v6 }
 0x2b6   :  { %v439_v12 = vsel %vm436_vm4, %v438_v7, %v434_v9  ;;  %2735 = vrcp.f32 %v789_v11  ;;  %vm615_vm7 = vmor %vm613_vm6, %vm614_vm5  ;;  %v799_v20 = vand.u32 2147483647, %v789_v11  ;;  %vm795_vm10 = vweird.f32 %v789_v11 }
 0x2b7   :  { %v440_v13 = vmul.f32 %v3383_v8, %v439_v12  ;;  %v610_v14 = vsub.f32 1.0, %v609_v10  ;;  %v801_v8 = vand.u32 2147483648, %v789_v11  ;;  %vm259_vm6 = vcmask 7168  }
 0x2b8   :  { %vm800_vm12 = vcmp.eq.f32.partialorder %v799_v20, 8.507059e+37 }
 0x2b9   :  { %441 = vst.msk [vmem:[%s3470_s9] sm:$0x1] %vm416_vm0, %v440_v13  ;;  %v611_v16 = vmul.f32 %v2734_v6, %v610_v14  ;;  %v802_v35 = vor.u32 1.1754944e-38, %v801_v8 }
 0x2bb   :  { %v612_v18 = vadd.f32 %v2734_v6, %v611_v16 }
 0x2bc   :  { %v2736_v19 = vpop.eup %2735 }
 0x2bd   :  { %v616_v22 = vsel %vm615_vm7, %v2734_v6, %v612_v18  ;;  %v791_v23 = vmul.f32 %v2736_v19, %v789_v11  ;;  %v971_v24 = vpop.xlane.xlu2 %970  ;;  %vm796_vm9 = vweird.f32 %v2736_v19 }
 0x2be   :  { %v621_v25 = vsel %vm618_vm8, %v620_v21, %v616_v22  ;;  %2737 = vrcp.f32 %v971_v24  ;;  %vm797_vm11 = vmor %vm795_vm10, %vm796_vm9  ;;  %v983_v40 = vand.u32 2147483648, %v971_v24  ;;  %v981_v43 = vand.u32 2147483647, %v971_v24 }
 0x2bf   :  { %v622_v26 = vmul.f32 %v3387_v33, %v621_v25  ;;  %v792_v27 = vsub.f32 1.0, %v791_v23  ;;  %vm977_vm14 = vweird.f32 %v971_v24 }
 0x2c0   :  { %v984_v46 = vor.u32 1.1754944e-38, %v983_v40  ;;  %vm982_vm1 = vcmp.eq.f32.partialorder %v981_v43, 8.507059e+37 }
 0x2c1   :  { %623 = vst.msk [vmem:[%s3470_s9 + $0x1] sm:$0x1] %vm416_vm0, %v622_v26  ;;  %v793_v30 = vmul.f32 %v2736_v19, %v792_v27 }
 0x2c3   :  { %v794_v31 = vadd.f32 %v2736_v19, %v793_v30 }
 0x2c4   :  { %v2738_v32 = vpop.eup %2737 }
 0x2c5   :  { %v798_v28 = vsel %vm797_vm11, %v2736_v19, %v794_v31  ;;  %v973_v36 = vmul.f32 %v2738_v32, %v971_v24  ;;  %v1153_v34 = vpop.xlane.xlu0 %1152  ;;  %vm978_vm13 = vweird.f32 %v2738_v32 }
 0x2c6   :  { %v803_v33 = vsel %vm800_vm12, %v802_v35, %v798_v28  ;;  %2739 = vrcp.f32 %v1153_v34  ;;  %vm979_vm15 = vmor %vm977_vm14, %vm978_vm13  ;;  %v1165_v54 = vand.u32 2147483648, %v1153_v34  ;;  %v1163_v56 = vand.u32 2147483647, %v1153_v34 }
 0x2c7   :  { %v804_v38 = vmul.f32 %v3391_v37, %v803_v33  ;;  %v974_v39 = vsub.f32 1.0, %v973_v36  ;;  %vm1159_vm3 = vweird.f32 %v1153_v34 }
 0x2c8   :  { %v1166_v29 = vor.u32 1.1754944e-38, %v1165_v54  ;;  %vm1164_vm5 = vcmp.eq.f32.partialorder %v1163_v56, 8.507059e+37 }
 0x2c9   :  { %805 = vst.msk [vmem:[%s3470_s9 + $0x2] sm:$0x1] %vm416_vm0, %v804_v38  ;;  %v975_v41 = vmul.f32 %v2738_v32, %v974_v39 }
 0x2cb   :  { %v976_v44 = vadd.f32 %v2738_v32, %v975_v41 }
 0x2cc   :  { %v2740_v45 = vpop.eup %2739 }
 0x2cd   :  { %v980_v48 = vsel %vm979_vm15, %v2738_v32, %v976_v44  ;;  %v1155_v49 = vmul.f32 %v2740_v45, %v1153_v34  ;;  %v1335_v51 = vpop.xlane.xlu1 %1334  ;;  %vm1160_vm2 = vweird.f32 %v2740_v45 }
 0x2ce   :  { %v985_v37 = vsel %vm982_vm1, %v984_v46, %v980_v48  ;;  %2741 = vrcp.f32 %v1335_v51  ;;  %vm1161_vm4 = vmor %vm1159_vm3, %vm1160_vm2  ;;  %v1347_v4 = vand.u32 2147483648, %v1335_v51  ;;  %v1345_v6 = vand.u32 2147483647, %v1335_v51 }
 0x2cf   :  { %v986_v52 = vmul.f32 %v3395_v42, %v985_v37  ;;  %v1156_v53 = vsub.f32 1.0, %v1155_v49  ;;  %vm1341_vm8 = vweird.f32 %v1335_v51 }
 0x2d0   :  { %v1348_v9 = vor.u32 1.1754944e-38, %v1347_v4  ;;  %vm1346_vm10 = vcmp.eq.f32.partialorder %v1345_v6, 8.507059e+37 }
 0x2d1   :  { %987 = vst.msk [vmem:[%s3470_s9 + $0x3] sm:$0x1] %vm416_vm0, %v986_v52  ;;  %v1157_v55 = vmul.f32 %v2740_v45, %v1156_v53 }
 0x2d3   :  { %v1158_v57 = vadd.f32 %v2740_v45, %v1157_v55 }
 0x2d4   :  { %v2742_v61 = vpop.eup %2741 }
 0x2d5   :  { %v1162_v42 = vsel %vm1161_vm4, %v2740_v45, %v1158_v57  ;;  %v1337_v62 = vmul.f32 %v2742_v61, %v1335_v51  ;;  %v256_v63 = vpop.xlane.xlu1 %255  ;;  %vm1342_vm7 = vweird.f32 %v2742_v61 }
 0x2d6   :  { %v1167_v0 = vsel %vm1164_vm5, %v1166_v29, %v1162_v42  ;;  %v258_v1 = vadd.f32 %v257_v59, %v256_v63  ;;  %vm1343_vm9 = vmor %vm1341_vm8, %vm1342_vm7 }
 0x2d7   :  { %v1168_v2 = vmul.f32 %v3399_v47, %v1167_v0  ;;  %v1338_v3 = vsub.f32 1.0, %v1337_v62 }
 0x2d8   :  { %260 = vst.msk [vmem:[%s3472_s10] sm:$0xff] %vm259_vm6, %v258_v1 }
 0x2d9   :  { %1169 = vst.msk [vmem:[%s3470_s9 + $0x4] sm:$0x1] %vm416_vm0, %v1168_v2  ;;  %v1339_v5 = vmul.f32 %v2742_v61, %v1338_v3 }
 0x2db   :  { %v1340_v7 = vadd.f32 %v2742_v61, %v1339_v5 }
 0x2dd   :  { %v1344_v10 = vsel %vm1343_vm9, %v2742_v61, %v1340_v7 }
 0x2de   :  { %v1349_v47 = vsel %vm1346_vm10, %v1348_v9, %v1344_v10 }
 0x2df   :  { %v1350_v11 = vmul.f32 %v3403_v50, %v1349_v47 }
 0x2e1   :  { %1351 = vst.msk [vmem:[%s3470_s9 + $0x5] sm:$0x1] %vm416_vm0, %v1350_v11 }
 0x2e5   :  { %v1517_v12 = vpop.xlane.xlu2 %1516 }
 0x2e6   :  { %2743 = vrcp.f32 %v1517_v12  ;;  %v1527_v18 = vand.u32 2147483647, %v1517_v12  ;;  %v1529_v19 = vand.u32 2147483648, %v1517_v12  ;;  %vm1523_vm12 = vweird.f32 %v1517_v12 }
 0x2e8   :  { %vm1528_vm14 = vcmp.eq.f32.partialorder %v1527_v18, 8.507059e+37  ;;  %v1530_v24 = vor.u32 1.1754944e-38, %v1529_v19 }
 0x2e9   :  { %v1699_v13 = vpop.xlane.xlu0 %1698 }
 0x2ea   :  { %2745 = vrcp.f32 %v1699_v13  ;;  %v1711_v25 = vand.u32 2147483648, %v1699_v13  ;;  %v1709_v8 = vand.u32 2147483647, %v1699_v13  ;;  %vm1705_vm1 = vweird.f32 %v1699_v13 }
 0x2ec   :  { %v2744_v14 = vpop.eup %2743  ;;  %v1712_v32 = vor.u32 1.1754944e-38, %v1711_v25  ;;  %vm1710_vm3 = vcmp.eq.f32.partialorder %v1709_v8, 8.507059e+37 }
 0x2ed   :  { %v1519_v15 = vmul.f32 %v2744_v14, %v1517_v12  ;;  %vm1524_vm11 = vweird.f32 %v2744_v14 }
 0x2ee   :  { %vm1525_vm13 = vmor %vm1523_vm12, %vm1524_vm11 }
 0x2ef   :  { %v1520_v16 = vsub.f32 1.0, %v1519_v15 }
 0x2f0   :  { %v2746_v17 = vpop.eup %2745 }
 0x2f1   :  { %v1521_v21 = vmul.f32 %v2744_v14, %v1520_v16  ;;  %v1701_v22 = vmul.f32 %v2746_v17, %v1699_v13  ;;  %vm1706_vm15 = vweird.f32 %v2746_v17 }
 0x2f2   :  { %vm1707_vm2 = vmor %vm1705_vm1, %vm1706_vm15 }
 0x2f3   :  { %v1522_v23 = vadd.f32 %v2744_v14, %v1521_v21  ;;  %v1702_v50 = vsub.f32 1.0, %v1701_v22 }
 0x2f5   :  { %v1526_v26 = vsel %vm1525_vm13, %v2744_v14, %v1522_v23  ;;  %v1703_v27 = vmul.f32 %v2746_v17, %v1702_v50 }
 0x2f6   :  { %v1531_v30 = vsel %vm1528_vm14, %v1530_v24, %v1526_v26 }
 0x2f7   :  { %v1532_v20 = vmul.f32 %v3408_v58, %v1531_v30  ;;  %v1704_v31 = vadd.f32 %v2746_v17, %v1703_v27 }
 0x2f9   :  { %1533 = vst.msk [vmem:[%s3470_s9 + $0x6] sm:$0x1] %vm416_vm0, %v1532_v20  ;;  %v1708_v35 = vsel %vm1707_vm2, %v2746_v17, %v1704_v31 }
 0x2fa   :  { %v1713_v28 = vsel %vm1710_vm3, %v1712_v32, %v1708_v35 }
 0x2fb   :  { %v1714_v36 = vmul.f32 %v3412_v60, %v1713_v28 }
 0x2fd   :  { %1715 = vst.msk [vmem:[%s3470_s9 + $0x7] sm:$0x1] %vm416_vm0, %v1714_v36 }

</bundles_post_ra>
